<compile_context>
chip_gen: v7x
topology: tpu7x:2x2x1
jax: 0.10.0
libtpu: 0.0.40
codegen_flags: <defaults>
</compile_context>

<pallas_src>
import functools

import jax
import jax.numpy as jnp
from jax.experimental import pallas as pl
from jax.experimental.pallas import tpu as pltpu


# ----------------------------------------------------------------------------
# Pallas kernel
# ----------------------------------------------------------------------------
def _channel_attention_kernel(x_ref, w1_ref, w2_ref, o_ref,
                              sum_ref, max_ref, *, inv_hw):
    k = pl.program_id(1)
    nk = pl.num_programs(1)

    @pl.when(k == 0)
    def _():
        sum_ref[...] = jnp.zeros_like(sum_ref)
        max_ref[...] = jnp.full_like(max_ref, -jnp.inf)

    x = x_ref[0]                                                  # (C, hw_tile)
    sum_ref[...] += jnp.sum(x, axis=1, keepdims=True)             # (C, 1)
    max_ref[...] = jnp.maximum(max_ref[...],
                               jnp.max(x, axis=1, keepdims=True))

    @pl.when(k == nk - 1)
    def _():
        w1 = w1_ref[...]                                          # (Cr, C)
        w2 = w2_ref[...]                                          # (C, Cr)

        def shared_mlp(v):                                        # v: (C, 1)
            h = jnp.dot(w1, v, preferred_element_type=jnp.float32)
            h = jnp.maximum(h, 0.0)                               # ReLU
            return jnp.dot(w2, h, preferred_element_type=jnp.float32)

        avg_out = shared_mlp(sum_ref[...] * inv_hw)               # (C, 1)
        max_out = shared_mlp(max_ref[...])                        # (C, 1)
        att = jax.nn.sigmoid(avg_out + max_out)                   # (C, 1)
        o_ref[...] = att[None].astype(o_ref.dtype)                # (1, C, 1)


# ----------------------------------------------------------------------------
# Wrapper
# ----------------------------------------------------------------------------
def _pick_hw_tile(hw, c, vmem_budget_bytes=8 * 1024 * 1024):
    """Largest multiple-of-128 divisor of hw whose double-buffered (C, tile)
    f32 input block stays under the budget; falls back to the full extent."""
    cap = max(128, (vmem_budget_bytes // (2 * c * 4)) // 128 * 128)
    cand = min(cap, (hw // 128) * 128)
    while cand >= 128:
        if hw % cand == 0:
            return cand
        cand -= 128
    # TODO(synk): HW not divisible by 128 falls back to one full-extent block;
    # for extreme (HW, C) this can exceed VMEM and would need a ragged tail.
    return hw


def channel_attention(x, w1, w2, *, hw_tile=None):
    """x: (B, C, H, W) f32; w1: (C//r, C); w2: (C, C//r)  ->  (B, C, 1, 1)."""
    B, C, H, W = x.shape
    Cr = w1.shape[0]
    HW = H * W
    xr = x.reshape(B, C, HW)                  # contiguous view, no data movement

    if hw_tile is None:
        hw_tile = _pick_hw_tile(HW, C)
    assert HW % hw_tile == 0, (HW, hw_tile)
    nk = HW // hw_tile

    kernel = functools.partial(_channel_attention_kernel,
                               inv_hw=1.0 / float(HW))
    out = pl.pallas_call(
        kernel,
        out_shape=jax.ShapeDtypeStruct((B, C, 1), jnp.float32),
        grid=(B, nk),                                   # reduction axis last
        in_specs=[
            pl.BlockSpec((1, C, hw_tile), lambda b, k: (b, 0, k)),
            pl.BlockSpec((Cr, C), lambda b, k: (0, 0)),  # resident weights
            pl.BlockSpec((C, Cr), lambda b, k: (0, 0)),
        ],
        out_specs=pl.BlockSpec((1, C, 1), lambda b, k: (b, 0, 0)),
        scratch_shapes=[
            pltpu.VMEM((C, 1), jnp.float32),            # running sum
            pltpu.VMEM((C, 1), jnp.float32),            # running max
        ],
        compiler_params=pltpu.CompilerParams(
            dimension_semantics=("parallel", "arbitrary"),
        ),
    )(xr, w1, w2)
    return out.reshape(B, C, 1, 1)


# ----------------------------------------------------------------------------
# Pure-JAX reference (mirrors the PyTorch module)
# ----------------------------------------------------------------------------
def channel_attention_ref(x, w1, w2):
    avg = jnp.mean(x, axis=(2, 3))            # (B, C)
    mx = jnp.max(x, axis=(2, 3))              # (B, C)

    def mlp(v):
        h = jnp.maximum(v @ w1.T, 0.0)        # (B, Cr)
        return h @ w2.T                       # (B, C)

    out = jax.nn.sigmoid(mlp(avg) + mlp(mx))
    return out[:, :, None, None]              # (B, C, 1, 1)


# ----------------------------------------------------------------------------
# Main
# ----------------------------------------------------------------------------
if __name__ == "__main__":
    key = jax.random.PRNGKey(0)
    k_x, k_w1, k_w2 = jax.random.split(key, 3)

    B, C, H, W = 2, 64, 16, 16
    reduction = 16
    Cr = C // reduction

    x = jax.random.uniform(k_x, (B, C, H, W), jnp.float32, -1.0, 1.0)
    bound1 = 1.0 / float(C) ** 0.5            # PyTorch Conv2d default-ish init
    bound2 = 1.0 / float(Cr) ** 0.5
    w1 = jax.random.uniform(k_w1, (Cr, C), jnp.float32, -bound1, bound1)
    w2 = jax.random.uniform(k_w2, (C, Cr), jnp.float32, -bound2, bound2)

    # hw_tile=128 -> HW=256 splits into 2 reduction steps (exercises the
    # accumulate path + pipelining); production sizes use the auto picker.
    fwd = jax.jit(functools.partial(channel_attention, hw_tile=128))
    out = fwd(x, w1, w2)
    jax.block_until_ready(out)

    ref = channel_attention_ref(x, w1, w2)
    assert out.shape == (B, C, 1, 1), out.shape
    assert bool(jnp.all(jnp.isfinite(out)))
    max_err = float(jnp.max(jnp.abs(out - ref)))
    assert max_err < 1e-4, max_err
    print("KERNEL_OK")
</pallas_src>

<mosaic_0001>
module attributes {stable_mosaic.version = 11 : i64} {
  func.func @_channel_attention_kernel(%arg0: i32, %arg1: i32, %arg2: memref<1x64x128xf32, #tpu.memory_space<vmem>>, %arg3: memref<4x64xf32, #tpu.memory_space<vmem>>, %arg4: memref<64x4xf32, #tpu.memory_space<vmem>>, %arg5: memref<1x64x1xf32, #tpu.memory_space<vmem>>, %arg6: memref<64x1xf32, #tpu.memory_space<vmem>>, %arg7: memref<64x1xf32, #tpu.memory_space<vmem>>) attributes {dimension_semantics = [#tpu.dimension_semantics<parallel>, #tpu.dimension_semantics<arbitrary>], iteration_bounds = array<i64: 2, 2>, scalar_prefetch = 0 : i64, scratch_operands = 2 : i64, tpu.core_type = #tpu.core_type<tc>, window_params = [{transform_indices = @transform_0, window_bounds = array<i64: 1, 64, 128>}, {pipeline_mode = #tpu.pipeline_mode<synchronous>, transform_indices = @transform_1, window_bounds = array<i64: 4, 64>}, {pipeline_mode = #tpu.pipeline_mode<synchronous>, transform_indices = @transform_2, window_bounds = array<i64: 64, 4>}, {transform_indices = @transform_3, window_bounds = array<i64: 1, 64, 1>}]} {
    %c0_i32 = arith.constant 0 : i32
    %0 = arith.cmpi eq, %arg1, %c0_i32 : i32
    %1 = arith.extui %0 : i1 to i32
    %c0_i32_0 = arith.constant 0 : i32
    %2 = arith.cmpi ne, %1, %c0_i32_0 : i32
    scf.if %2 {
      %cst_13 = arith.constant 0.000000e+00 : f32
      %18 = vector.broadcast %cst_13 : f32 to vector<64x1xf32>
      %c0_14 = arith.constant 0 : index
      %c0_15 = arith.constant 0 : index
      %19 = vector.load %arg6[%c0_14, %c0_15] : memref<64x1xf32, #tpu.memory_space<vmem>>, vector<64x1xf32>
      tpu.vector_store %arg6[%c0_14, %c0_15], %18 {strides = array<i32>} : memref<64x1xf32, #tpu.memory_space<vmem>>, vector<64x1xf32>,
      %cst_16 = arith.constant 0xFF800000 : f32
      %20 = vector.broadcast %cst_16 : f32 to vector<64x1xf32>
      %c0_17 = arith.constant 0 : index
      %c0_18 = arith.constant 0 : index
      %21 = vector.load %arg7[%c0_17, %c0_18] : memref<64x1xf32, #tpu.memory_space<vmem>>, vector<64x1xf32>
      tpu.vector_store %arg7[%c0_17, %c0_18], %20 {strides = array<i32>} : memref<64x1xf32, #tpu.memory_space<vmem>>, vector<64x1xf32>,
    } else {
    }
    %c0 = arith.constant 0 : index
    %c0_1 = arith.constant 0 : index
    %c0_2 = arith.constant 0 : index
    %3 = vector.load %arg2[%c0, %c0_1, %c0_2] : memref<1x64x128xf32, #tpu.memory_space<vmem>>, vector<1x64x128xf32>
    %4 = vector.shape_cast %3 : vector<1x64x128xf32> to vector<64x128xf32>
    %c0_3 = arith.constant 0 : index
    %c0_4 = arith.constant 0 : index
    %5 = vector.load %arg6[%c0_3, %c0_4] : memref<64x1xf32, #tpu.memory_space<vmem>>, vector<64x1xf32>
    %cst = arith.constant dense<0.000000e+00> : vector<64xf32>
    %6 = vector.multi_reduction <add>, %4, %cst [1] : vector<64x128xf32> to vector<64xf32>
    %7 = vector.shape_cast %6 : vector<64xf32> to vector<64x1xf32>
    %8 = arith.addf %5, %7 : vector<64x1xf32>
    %c0_5 = arith.constant 0 : index
    %c0_6 = arith.constant 0 : index
    %9 = vector.load %arg6[%c0_5, %c0_6] : memref<64x1xf32, #tpu.memory_space<vmem>>, vector<64x1xf32>
    tpu.vector_store %arg6[%c0_5, %c0_6], %8 {strides = array<i32>} : memref<64x1xf32, #tpu.memory_space<vmem>>, vector<64x1xf32>,
    %c0_7 = arith.constant 0 : index
    %c0_8 = arith.constant 0 : index
    %10 = vector.load %arg7[%c0_7, %c0_8] : memref<64x1xf32, #tpu.memory_space<vmem>>, vector<64x1xf32>
    %cst_9 = arith.constant dense<0xFF800000> : vector<64xf32>
    %11 = vector.multi_reduction <maximumf>, %4, %cst_9 [1] : vector<64x128xf32> to vector<64xf32>
    %12 = vector.shape_cast %11 : vector<64xf32> to vector<64x1xf32>
    %13 = arith.maximumf %10, %12 : vector<64x1xf32>
    %c0_10 = arith.constant 0 : index
    %c0_11 = arith.constant 0 : index
    %14 = vector.load %arg7[%c0_10, %c0_11] : memref<64x1xf32, #tpu.memory_space<vmem>>, vector<64x1xf32>
    tpu.vector_store %arg7[%c0_10, %c0_11], %13 {strides = array<i32>} : memref<64x1xf32, #tpu.memory_space<vmem>>, vector<64x1xf32>,
    %c1_i32 = arith.constant 1 : i32
    %15 = arith.cmpi eq, %arg1, %c1_i32 : i32
    %16 = arith.extui %15 : i1 to i32
    %c0_i32_12 = arith.constant 0 : i32
    %17 = arith.cmpi ne, %16, %c0_i32_12 : i32
    scf.if %17 {
      %c0_13 = arith.constant 0 : index
      %c0_14 = arith.constant 0 : index
      %18 = vector.load %arg3[%c0_13, %c0_14] : memref<4x64xf32, #tpu.memory_space<vmem>>, vector<4x64xf32>
      %c0_15 = arith.constant 0 : index
      %c0_16 = arith.constant 0 : index
      %19 = vector.load %arg4[%c0_15, %c0_16] : memref<64x4xf32, #tpu.memory_space<vmem>>, vector<64x4xf32>
      %c0_17 = arith.constant 0 : index
      %c0_18 = arith.constant 0 : index
      %20 = vector.load %arg6[%c0_17, %c0_18] : memref<64x1xf32, #tpu.memory_space<vmem>>, vector<64x1xf32>
      %cst_19 = arith.constant 3.906250e-03 : f32
      %21 = vector.broadcast %cst_19 : f32 to vector<64x1xf32>
      %22 = arith.mulf %20, %21 : vector<64x1xf32>
      %cst_20 = arith.constant dense<0.000000e+00> : vector<4x1xf32>
      %23 = tpu.matmul %18, %22, %cst_20 {dimension_numbers = #tpu.dot_dimension_numbers<[1], [0], [0], [1], [0, 0, 1, 1], [], []>} : vector<4x64xf32>, vector<64x1xf32>, vector<4x1xf32> -> vector<4x1xf32>
      %cst_21 = arith.constant 0.000000e+00 : f32
      %24 = vector.broadcast %cst_21 : f32 to vector<4x1xf32>
      %25 = arith.maximumf %23, %24 : vector<4x1xf32>
      %cst_22 = arith.constant dense<0.000000e+00> : vector<64x1xf32>
      %26 = tpu.matmul %19, %25, %cst_22 {dimension_numbers = #tpu.dot_dimension_numbers<[1], [0], [0], [1], [0, 0, 1, 1], [], []>} : vector<64x4xf32>, vector<4x1xf32>, vector<64x1xf32> -> vector<64x1xf32>
      %c0_23 = arith.constant 0 : index
      %c0_24 = arith.constant 0 : index
      %27 = vector.load %arg7[%c0_23, %c0_24] : memref<64x1xf32, #tpu.memory_space<vmem>>, vector<64x1xf32>
      %cst_25 = arith.constant dense<0.000000e+00> : vector<4x1xf32>
      %28 = tpu.matmul %18, %27, %cst_25 {dimension_numbers = #tpu.dot_dimension_numbers<[1], [0], [0], [1], [0, 0, 1, 1], [], []>} : vector<4x64xf32>, vector<64x1xf32>, vector<4x1xf32> -> vector<4x1xf32>
      %cst_26 = arith.constant 0.000000e+00 : f32
      %29 = vector.broadcast %cst_26 : f32 to vector<4x1xf32>
      %30 = arith.maximumf %28, %29 : vector<4x1xf32>
      %cst_27 = arith.constant dense<0.000000e+00> : vector<64x1xf32>
      %31 = tpu.matmul %19, %30, %cst_27 {dimension_numbers = #tpu.dot_dimension_numbers<[1], [0], [0], [1], [0, 0, 1, 1], [], []>} : vector<64x4xf32>, vector<4x1xf32>, vector<64x1xf32> -> vector<64x1xf32>
      %32 = arith.addf %26, %31 : vector<64x1xf32>
      %33 = arith.negf %32 : vector<64x1xf32>
      %34 = math.exp %33 : vector<64x1xf32>
      %cst_28 = arith.constant 1.000000e+00 : f32
      %35 = vector.broadcast %cst_28 : f32 to vector<64x1xf32>
      %36 = arith.addf %35, %34 : vector<64x1xf32>
      %37 = arith.divf %35, %36 : vector<64x1xf32>
      %38 = vector.shape_cast %37 : vector<64x1xf32> to vector<1x64x1xf32>
      %c0_29 = arith.constant 0 : index
      %c0_30 = arith.constant 0 : index
      %c0_31 = arith.constant 0 : index
      %39 = vector.load %arg5[%c0_29, %c0_30, %c0_31] : memref<1x64x1xf32, #tpu.memory_space<vmem>>, vector<1x64x1xf32>
      tpu.vector_store %arg5[%c0_29, %c0_30, %c0_31], %38 {strides = array<i32>} : memref<1x64x1xf32, #tpu.memory_space<vmem>>, vector<1x64x1xf32>,
    } else {
    }
    return
  }
  func.func @transform_0(%arg0: i32, %arg1: i32) -> (i32, i32, i32) {
    %c0_i32 = arith.constant 0 : i32
    %c0_i32_0 = arith.constant 0 : i32
    return %arg0, %c0_i32, %arg1 : i32, i32, i32
  }
  func.func @transform_1(%arg0: i32, %arg1: i32) -> (i32, i32) {
    %c0_i32 = arith.constant 0 : i32
    %c0_i32_0 = arith.constant 0 : i32
    %c0_i32_1 = arith.constant 0 : i32
    return %c0_i32, %c0_i32_0 : i32, i32
  }
  func.func @transform_2(%arg0: i32, %arg1: i32) -> (i32, i32) {
    %c0_i32 = arith.constant 0 : i32
    %c0_i32_0 = arith.constant 0 : i32
    %c0_i32_1 = arith.constant 0 : i32
    return %c0_i32, %c0_i32_0 : i32, i32
  }
  func.func @transform_3(%arg0: i32, %arg1: i32) -> (i32, i32, i32) {
    %c0_i32 = arith.constant 0 : i32
    %c0_i32_0 = arith.constant 0 : i32
    %c0_i32_1 = arith.constant 0 : i32
    return %arg0, %c0_i32, %c0_i32_0 : i32, i32, i32
  }
}

</mosaic_0001>

<bundles_post_ra>
// kernel: channel_attention.1
= control target key start
LH: loop header
LB: loop body
LE: loop exit
PB: predicated region body
PF: predicated region fallthrough
CT: control target
= control target key end

     0   :  { %s1266_s12 = smov 0   ;;  %s1268_s13 = smov 0   ;;  %s1464_s0 = inlined_call_operand.vmem [shape: f32[2,64,256], index: 0, kind: input, shape index: {}]   ;;  %s1465_s1 = inlined_call_operand.vmem [shape: f32[4,64], index: 1, kind: input, shape index: {}]   ;;  %s1466_s2 = inlined_call_operand.vmem [shape: f32[64,4], index: 2, kind: input, shape index: {}]   ;;  %s1467_s3 = inlined_call_operand.vmem [shape: f32[2,64,1], index: 3, kind: output, shape index: {}]  }
   0x1   :  { %s1270_s14 = smov 0   ;;  %s1272_s15 = smov 0  }
   0x2   :  { %s1274_s16 = smov 0   ;;  %s1276_s17 = smov 0  }
   0x3   :  { %s1278_s18 = smov 0  }
   0x4 LB: > { %s22_s19 = sadd.s32 1, %s1231_s16  ;;  %s25_s20 = sadd.s32 1, %s1235_s17  ;;  %s1239_s18 = sphi %s1278_s18, %s13_s18   ;;  %s1235_s17 = sphi %s1276_s17, %s1473_s17   ;;  %s1231_s16 = sphi %s1274_s16, %s1472_s16   ;;  %s1227_s15 = sphi %s1272_s15, %s1471_s15   ;;  %s1223_s14 = sphi %s1270_s14, %s1470_s14   ;;  %s1219_s13 = sphi %s1268_s13, %s1469_s13   ;;  %s1215_s12 = sphi %s1266_s12, %s1468_s12  }
   0x5   : > { %p23_p0 = scmp.ge.s32.totalorder %s22_s19, 2  ;;  %p41_p1 = scmp.ne.s32.totalorder %s1219_s13, %s1215_s12 }
   0x6   : > { %p42_p2 = scmp.eq.s32.totalorder %s1239_s18, 0  ;;  %s34_s24 = sadd.s32 1, %s1219_s13 }
   0x7   : > { %s1475_s19 = smov (%p23_p0, %s22_s19), 0  ;;  %s1477_s20 = smov (!%p23_p0, %s25_s20), %s1235_s17 }
   0x8   : > { %p43_p3 = por %p42_p2, %p41_p1  ;;  %p27_p4 = scmp.ge.s32.totalorder %s1477_s20, 2 }
   0x9   : > { %s30_s21 = ssub.s32 %s1231_s16, %s1475_s19  ;;  %p917_p6 = scmp.ge.s32.totalorder %s1239_s18, 4 }
   0xa   : > { %s1479_s20 = smov (%p27_p4, %s1477_s20), 0 }
   0xb   : > { %s29_s22 = ssub.s32 %s1235_s17, %s1479_s20  ;;  %141 = sbr.rel (%p917_p6) target bundleno = 28 (0x1c), region = 24 }
   0xc   : > { %s31_s23 = sor.u32 %s30_s21, %s29_s22 }
   0xd   : > { %p32_p5 = scmp.eq.s32.totalorder %s31_s23, 0 }
   0xf   : > { %s1317_s25 = scalar_select %p32_p5, %s1219_s13, %s34_s24  }
  0x12   : > { %144 = sbr.rel (!%p43_p3) target bundleno = 28 (0x1c), region = 28  ;;  %s146_s26 = sand.u32 (%p43_p3), 1, %s1219_s13  }
  0x13   : > { %s919_s27 = sshll.u32 (%p43_p3), %s1235_s17, 4  ;;  %s918_s28 = sshll.u32 (%p43_p3), %s146_s26, 6 }
  0x14   : > { %s150_s29 = sadd.s32 (%p43_p3), %s1231_s16, %s919_s27  ;;  %s148_s7 = scalar_lea.vmem (%p43_p3), [#allocation4], %s918_s28 }
  0x15   : > { %s920_s30 = sshll.u32 (%p43_p3), %s150_s29, 3 }
  0x16   : > { %s152_s6 = scalar_lea.vmem (%p43_p3), %s1464_s0, %s920_s30 }
  0x17   : > { %v194_v0 = vld [vmem:[%s152_s6] sm:$0xff] (%p43_p3)  ;;  %v196_v1 = vld [vmem:[%s152_s6 + $0x10] sm:$0xff] (%p43_p3) }
  0x18   : > { %v198_v2 = vld [vmem:[%s152_s6 + $0x20] sm:$0xff] (%p43_p3)  ;;  %195 = vst [vmem:[%s148_s7] sm:$0xff] (%p43_p3), %v194_v0  ;;  %197 = vst [vmem:[%s148_s7 + $0x8] sm:$0xff] (%p43_p3), %v196_v1  ;;  %v200_v3 = vld [vmem:[%s152_s6 + $0x30] sm:$0xff] (%p43_p3) }
  0x19   : > { %199 = vst [vmem:[%s148_s7 + $0x10] sm:$0xff] %v198_v2  ;;  %v202_v4 = vld [vmem:[%s152_s6 + $0x40] sm:$0xff]  ;;  %v204_v5 = vld [vmem:[%s152_s6 + $0x50] sm:$0xff]  ;;  %201 = vst [vmem:[%s148_s7 + $0x18] sm:$0xff] %v200_v3 }
  0x1a   : > { %203 = vst [vmem:[%s148_s7 + $0x20] sm:$0xff] %v202_v4  ;;  %205 = vst [vmem:[%s148_s7 + $0x28] sm:$0xff] %v204_v5  ;;  %v206_v6 = vld [vmem:[%s152_s6 + $0x60] sm:$0xff]  ;;  %v208_v7 = vld [vmem:[%s152_s6 + $0x70] sm:$0xff] }
  0x1b   : > { %207 = vst [vmem:[%s148_s7 + $0x30] sm:$0xff] %v206_v6  ;;  %209 = vst [vmem:[%s148_s7 + $0x38] sm:$0xff] %v208_v7 }
  0x1c PF: > { %p921_p7 = scmp.ge.s32.totalorder %s1239_s18, 1  ;;  %p214_p8 = scmp.lt.s32.totalorder %s1239_s18, 5 }
  0x1e   : > { %p215_p9 = pnand %p921_p7, %p214_p8 }
  0x1f   : > { %s221_s8 = sand.u32 (!%p215_p9), 1, %s1215_s12   ;;  %p244_p10 = scmp.lt.s32.totalorder (!%p215_p9), %s1227_s15, 1 }
  0x20   : > { %218 = sbr.rel (%p215_p9) target bundleno = 727 (0x2d7), region = 66  ;;  %s922_s9 = sshll.u32 (!%p215_p9), %s221_s8, 6 }
  0x21   : > { %s1336_s23 = scalar_lea.vmem (!%p215_p9), [#allocation4], %s922_s9  ;;  %p925_p11 = scmp.ne.s32.totalorder (!%p215_p9), %s1223_s14, 0 }
  0x27   : > { %s1481_s15 = smov (!%p244_p10, %s1227_s15), 1  ;;  %252 = sbr.rel (%p925_p11) target bundleno = 49 (0x31), region = 74 }
  0x28   : > { %s957_s10 = sshll.u32 %s1481_s15, 6  ;;  %vm253_vm0 = vcmask (!%p925_p11), 7168   ;;  %v1241_v8 = vmov (!%p925_p11), 0.0   ;;  %v1242_v9 = vmov (!%p925_p11), -inf  }
  0x29   : > { %s1334_s22 = scalar_lea.vmem %s1467_s3, %s957_s10  ;;  %254 = vst.msk [vmem:[#allocation2] sm:$0xff] (!%p925_p11), %vm253_vm0, %v1241_v8  ;;  %255 = vst.msk [vmem:[#allocation2 + $0x8] sm:$0xff] (!%p925_p11), %vm253_vm0, %v1241_v8 }
  0x2a   : > { %256 = vst.msk [vmem:[#allocation2 + $0x10] sm:$0xff] (!%p925_p11), %vm253_vm0, %v1241_v8  ;;  %257 = vst.msk [vmem:[#allocation2 + $0x18] sm:$0xff] (!%p925_p11), %vm253_vm0, %v1241_v8 }
  0x2b   : > { %258 = vst.msk [vmem:[#allocation2 + $0x20] sm:$0xff] (!%p925_p11), %vm253_vm0, %v1241_v8  ;;  %259 = vst.msk [vmem:[#allocation2 + $0x28] sm:$0xff] (!%p925_p11), %vm253_vm0, %v1241_v8 }
  0x2c   : > { %260 = vst.msk [vmem:[#allocation2 + $0x30] sm:$0xff] (!%p925_p11), %vm253_vm0, %v1241_v8  ;;  %261 = vst.msk [vmem:[#allocation2 + $0x38] sm:$0xff] (!%p925_p11), %vm253_vm0, %v1241_v8 }
  0x2d   : > { %262 = vst.msk [vmem:[#allocation3] sm:$0xff] (!%p925_p11), %vm253_vm0, %v1242_v9  ;;  %263 = vst.msk [vmem:[#allocation3 + $0x8] sm:$0xff] (!%p925_p11), %vm253_vm0, %v1242_v9 }
  0x2e   : > { %264 = vst.msk [vmem:[#allocation3 + $0x10] sm:$0xff] %vm253_vm0, %v1242_v9  ;;  %265 = vst.msk [vmem:[#allocation3 + $0x18] sm:$0xff] %vm253_vm0, %v1242_v9 }
  0x2f   : > { %266 = vst.msk [vmem:[#allocation3 + $0x20] sm:$0xff] %vm253_vm0, %v1242_v9  ;;  %267 = vst.msk [vmem:[#allocation3 + $0x28] sm:$0xff] %vm253_vm0, %v1242_v9 }
  0x30   : > { %268 = vst.msk [vmem:[#allocation3 + $0x30] sm:$0xff] %vm253_vm0, %v1242_v9  ;;  %269 = vst.msk [vmem:[#allocation3 + $0x38] sm:$0xff] %vm253_vm0, %v1242_v9 }
  0x31 PF: > { %v272_v10 = vld [vmem:[%s1336_s23 + $0x10] sm:$0xff]  ;;  %v270_v11 = vld [vmem:[%s1336_s23] sm:$0xff]  ;;  %v273_v12 = vld [vmem:[%s1336_s23 + $0x18] sm:$0xff]  ;;  %vm310_vm1 = vcmask 7168   ;;  %p926_p12 = scmp.ne.s32.totalorder %s1223_s14, 1 }
  0x32   : > { %290 = vadd.xlane.f32.xlu1 %v272_v10  ;;  %286 = vadd.xlane.f32.xlu0 %v270_v11  ;;  %v271_v13 = vld [vmem:[%s1336_s23 + $0x8] sm:$0xff]  ;;  %v274_v15 = vld [vmem:[%s1336_s23 + $0x20] sm:$0xff]  ;;  %v277_v16 = vld [vmem:[%s1336_s23 + $0x38] sm:$0xff]  ;;  %v1243_v5 = vmov (!%p926_p12), 0.0|0.0   ;;  %vm1244_vm2 = vmmov (!%p926_p12), 0   ;;  %vm388_vm3 = vcmask (!%p926_p12), 523264  }
  0x33   : > { %v275_v14 = vld [vmem:[%s1336_s23 + $0x28] sm:$0xff]  ;;  %v276_v17 = vld [vmem:[%s1336_s23 + $0x30] sm:$0xff]  ;;  %v278_v19 = vld [vmem:[#allocation2] sm:$0xff]  ;;  %1060 = vmatprep.subr.bf16.mxu1 (!%p926_p12), %v1243_v5  ;;  %vm542_vm4 = vcmask (!%p926_p12), 31744   ;;  %vm567_vm5 = vcmask (!%p926_p12), 1043456  }
  0x34   : > { %v280_v18 = vld [vmem:[#allocation2 + $0x10] sm:$0xff]  ;;  %v281_v24 = vld [vmem:[#allocation2 + $0x18] sm:$0xff]  ;;  %v279_v25 = vld [vmem:[#allocation2 + $0x8] sm:$0xff] }
  0x35   : > { %v283_v30 = vld [vmem:[#allocation2 + $0x28] sm:$0xff]  ;;  %v282_v31 = vld [vmem:[#allocation2 + $0x20] sm:$0xff] }
  0x36   : > { %292 = vadd.xlane.f32.xlu1 %v273_v12  ;;  %288 = vadd.xlane.f32.xlu0 %v271_v13  ;;  %v285_v36 = vld [vmem:[#allocation2 + $0x38] sm:$0xff]  ;;  %v284_v37 = vld [vmem:[#allocation2 + $0x30] sm:$0xff]  ;;  %v324_v54 = vld [vmem:[#allocation3 + $0x28] sm:$0xff] }
  0x37   : > { %v320_v42 = vld [vmem:[#allocation3 + $0x8] sm:$0xff]  ;;  %v319_v43 = vld [vmem:[#allocation3] sm:$0xff]  ;;  %v326_v60 = vld [vmem:[#allocation3 + $0x38] sm:$0xff] }
  0x38   : > { %v322_v48 = vld [vmem:[#allocation3 + $0x18] sm:$0xff]  ;;  %v321_v49 = vld [vmem:[#allocation3 + $0x10] sm:$0xff]  ;;  %v323_v55 = vld [vmem:[#allocation3 + $0x20] sm:$0xff] }
  0x39   : > { %v325_v61 = vld [vmem:[#allocation3 + $0x30] sm:$0xff] }
  0x3a   : > { %296 = vadd.xlane.f32.xlu1 %v275_v14  ;;  %294 = vadd.xlane.f32.xlu0 %v274_v15 }
  0x3e   : > { %300 = vadd.xlane.f32.xlu1 %v277_v16  ;;  %298 = vadd.xlane.f32.xlu0 %v276_v17 }
  0x42   : > { %329 = vmax.xlane.f32.xlu1 %v271_v13  ;;  %327 = vmax.xlane.f32.xlu0 %v270_v11 }
  0x46   : > { %333 = vmax.xlane.f32.xlu1 %v273_v12  ;;  %331 = vmax.xlane.f32.xlu0 %v272_v10  ;;  %v1245_v10 = vmov (!%p926_p12), 0.0  }
  0x47   : > { %1010 = vmatprep.mubr.msk.f32.mxu1 (!%p926_p12), %vm1244_vm2, %v1245_v10 }
  0x4a   : > { %337 = vmax.xlane.f32.xlu1 %v275_v14  ;;  %335 = vmax.xlane.f32.xlu0 %v274_v15 }
  0x4e   : > { %341 = vmax.xlane.f32.xlu1 %v277_v16  ;;  %339 = vmax.xlane.f32.xlu0 %v276_v17 }
  0xbf   : > { %v291_v20 = vpop.xlane.xlu1 %290  ;;  %v287_v21 = vpop.xlane.xlu0 %286 }
  0xc0   : > { %v304_v22 = vadd.f32 %v291_v20, %v280_v18  ;;  %v302_v23 = vadd.f32 %v287_v21, %v278_v19 }
  0xc2   : > { %313 = vst.msk [vmem:[#allocation2 + $0x10] sm:$0xff] %vm310_vm1, %v304_v22  ;;  %311 = vst.msk [vmem:[#allocation2] sm:$0xff] %vm310_vm1, %v302_v23 }
  0xc3   : > { %v293_v26 = vpop.xlane.xlu1 %292  ;;  %v289_v27 = vpop.xlane.xlu0 %288 }
  0xc4   : > { %v305_v28 = vadd.f32 %v293_v26, %v281_v24  ;;  %v303_v29 = vadd.f32 %v289_v27, %v279_v25  ;;  %v363_v26 = vld [vmem:[%s1465_s1] sm:$0xf] (!%p926_p12) }
  0xc6   : > { %314 = vst.msk [vmem:[#allocation2 + $0x18] sm:$0xff] %vm310_vm1, %v305_v28  ;;  %312 = vst.msk [vmem:[#allocation2 + $0x8] sm:$0xff] %vm310_vm1, %v303_v29 }
  0xc7   : > { %v297_v32 = vpop.xlane.xlu1 %296  ;;  %v295_v33 = vpop.xlane.xlu0 %294 }
  0xc8   : > { %v307_v34 = vadd.f32 %v297_v32, %v283_v30  ;;  %v306_v35 = vadd.f32 %v295_v33, %v282_v31 }
  0xc9   : > { %v372_v2 = vld [vmem:[#allocation2] sm:$0xff] (!%p926_p12)  ;;  %v374_v4 = vld [vmem:[#allocation2 + $0x10] sm:$0xff] (!%p926_p12) }
  0xca   : > { %316 = vst.msk [vmem:[#allocation2 + $0x28] sm:$0xff] %vm310_vm1, %v307_v34  ;;  %315 = vst.msk [vmem:[#allocation2 + $0x20] sm:$0xff] %vm310_vm1, %v306_v35  ;;  %v380_v6 = vmul.f32 (!%p926_p12), 0.00390625, %v372_v2  ;;  %v382_v9 = vmul.f32 (!%p926_p12), 0.00390625, %v374_v4 }
  0xcb   : > { %v301_v38 = vpop.xlane.xlu1 %300  ;;  %v299_v39 = vpop.xlane.xlu0 %298 }
  0xcc   : > { %v309_v40 = vadd.f32 %v301_v38, %v285_v36  ;;  %v308_v41 = vadd.f32 %v299_v39, %v284_v37  ;;  %v364_v37 = vld [vmem:[%s1466_s2] sm:$0xff] (!%p926_p12) }
  0xcd   : > { %v373_v3 = vld [vmem:[#allocation2 + $0x8] sm:$0xff] (!%p926_p12)  ;;  %v375_v8 = vld [vmem:[#allocation2 + $0x18] sm:$0xff] (!%p926_p12)  ;;  %1034 = vmatprep.mubr.msk.f32.mxu0 (!%p926_p12), %vm542_vm4, %v364_v37 }
  0xce   : > { %318 = vst.msk [vmem:[#allocation2 + $0x38] sm:$0xff] %vm310_vm1, %v309_v40  ;;  %317 = vst.msk [vmem:[#allocation2 + $0x30] sm:$0xff] %vm310_vm1, %v308_v41  ;;  %v381_v7 = vmul.f32 (!%p926_p12), 0.00390625, %v373_v3  ;;  %v383_v11 = vmul.f32 (!%p926_p12), 0.00390625, %v375_v8 }
  0xcf   : > { %v330_v44 = vpop.xlane.xlu1 %329  ;;  %v328_v45 = vpop.xlane.xlu0 %327 }
  0xd0   : > { %v344_v46 = vmax.f32 %v320_v42, %v330_v44  ;;  %v343_v47 = vmax.f32 %v319_v43, %v328_v45  ;;  %v1061_v14 = vpack.c.bf16 (!%p926_p12), %v381_v7, %v380_v6  ;;  %v1064_v15 = vpack.c.bf16 (!%p926_p12), %v383_v11, %v382_v9  ;;  %v365_v43 = vld [vmem:[%s1466_s2 + $0x8] sm:$0xff] (!%p926_p12)  ;;  %v366_v45 = vld [vmem:[%s1466_s2 + $0x10] sm:$0xff] (!%p926_p12) }
  0xd1   : > { %v376_v12 = vld [vmem:[#allocation2 + $0x20] sm:$0xff] (!%p926_p12)  ;;  %v377_v13 = vld [vmem:[#allocation2 + $0x28] sm:$0xff] (!%p926_p12) }
  0xd2   : > { %352 = vst.msk [vmem:[#allocation3 + $0x8] sm:$0xff] %vm310_vm1, %v344_v46  ;;  %351 = vst.msk [vmem:[#allocation3] sm:$0xff] %vm310_vm1, %v343_v47  ;;  %1062 = vmatpush3.bf16.msra.mxu1 (!%p926_p12), %v1061_v14  ;;  %v384_v16 = vmul.f32 (!%p926_p12), 0.00390625, %v376_v12  ;;  %v385_v17 = vmul.f32 (!%p926_p12), 0.00390625, %v377_v13  ;;  %v367_v46 = vld [vmem:[%s1466_s2 + $0x18] sm:$0xff] (!%p926_p12)  ;;  %v368_v47 = vld [vmem:[%s1466_s2 + $0x20] sm:$0xff] (!%p926_p12) }
  0xd3   : > { %v334_v50 = vpop.xlane.xlu1 %333  ;;  %v332_v51 = vpop.xlane.xlu0 %331  ;;  %1063 = vmatprep.subr.bf16.mxu1 (!%p926_p12), %v1243_v5 }
  0xd4   : > { %v346_v52 = vmax.f32 %v322_v48, %v334_v50  ;;  %v345_v53 = vmax.f32 %v321_v49, %v332_v51  ;;  %v1067_v20 = vpack.c.bf16 (!%p926_p12), %v385_v17, %v384_v16  ;;  %v369_v48 = vld [vmem:[%s1466_s2 + $0x28] sm:$0xff] (!%p926_p12)  ;;  %v370_v49 = vld [vmem:[%s1466_s2 + $0x30] sm:$0xff] (!%p926_p12)  ;;  %v371_v50 = vld [vmem:[%s1466_s2 + $0x38] sm:$0xff] (!%p926_p12) }
  0xd5   : > { %v378_v18 = vld [vmem:[#allocation2 + $0x30] sm:$0xff] (!%p926_p12)  ;;  %v379_v19 = vld [vmem:[#allocation2 + $0x38] sm:$0xff] (!%p926_p12) }
  0xd6   : > { %354 = vst.msk [vmem:[#allocation3 + $0x18] sm:$0xff] %vm310_vm1, %v346_v52  ;;  %353 = vst.msk [vmem:[#allocation3 + $0x10] sm:$0xff] %vm310_vm1, %v345_v53  ;;  %1065 = vmatpush3.bf16.msra.mxu1 (!%p926_p12), %v1064_v15  ;;  %v386_v21 = vmul.f32 (!%p926_p12), 0.00390625, %v378_v18  ;;  %v387_v22 = vmul.f32 (!%p926_p12), 0.00390625, %v379_v19 }
  0xd7   : > { %v338_v56 = vpop.xlane.xlu1 %337  ;;  %v336_v57 = vpop.xlane.xlu0 %335  ;;  %1066 = vmatprep.subr.bf16.mxu1 (!%p926_p12), %v1243_v5 }
  0xd8   : > { %v348_v58 = vmax.f32 %v324_v54, %v338_v56  ;;  %v347_v59 = vmax.f32 %v323_v55, %v336_v57  ;;  %362 = sbr.rel (%p926_p12) target bundleno = 727 (0x2d7), region = 78  ;;  %v1070_v23 = vpack.c.bf16 (!%p926_p12), %v387_v22, %v386_v21 }
  0xd9   : > { %v463_v24 = vld [vmem:[#allocation3] sm:$0xff] (!%p926_p12)  ;;  %v464_v25 = vld [vmem:[#allocation3 + $0x8] sm:$0xff] (!%p926_p12) }
  0xda   : > { %356 = vst.msk [vmem:[#allocation3 + $0x28] sm:$0xff] %vm310_vm1, %v348_v58  ;;  %355 = vst.msk [vmem:[#allocation3 + $0x20] sm:$0xff] %vm310_vm1, %v347_v59  ;;  %1068 = vmatpush3.bf16.msra.mxu1 (!%p926_p12), %v1067_v20  ;;  %v1073_v27 = vpack.c.bf16 (!%p926_p12), %v464_v25, %v463_v24 }
  0xdb   : > { %v342_v62 = vpop.xlane.xlu1 %341  ;;  %v340_v63 = vpop.xlane.xlu0 %339  ;;  %1069 = vmatprep.subr.bf16.mxu1 (!%p926_p12), %v1243_v5 }
  0xdc   : > { %v350_v0 = vmax.f32 %v326_v60, %v342_v62  ;;  %v349_v1 = vmax.f32 %v325_v61, %v340_v63 }
  0xdd   : > { %v465_v28 = vld [vmem:[#allocation3 + $0x10] sm:$0xff] (!%p926_p12)  ;;  %v466_v29 = vld [vmem:[#allocation3 + $0x18] sm:$0xff] (!%p926_p12) }
  0xde   : > { %358 = vst.msk [vmem:[#allocation3 + $0x38] sm:$0xff] %vm310_vm1, %v350_v0  ;;  %357 = vst.msk [vmem:[#allocation3 + $0x30] sm:$0xff] %vm310_vm1, %v349_v1  ;;  %1071 = vmatpush3.bf16.msra.mxu1 (!%p926_p12), %v1070_v23  ;;  %v1076_v30 = vpack.c.bf16 (!%p926_p12), %v466_v29, %v465_v28 }
  0xdf   : > { %1072 = vmatprep.subr.bf16.mxu1 %v1243_v5 }
  0xe1   : > { %1011 = vmatmul.mubr.msk.f32.vlgmr.msra.gmra.mrb[0].mxu1 %vm388_vm3, %v363_v26  ;;  %v467_v31 = vld [vmem:[#allocation3 + $0x20] sm:$0xff]  ;;  %v468_v32 = vld [vmem:[#allocation3 + $0x28] sm:$0xff] }
  0xe2   : > { %1074 = vmatpush3.bf16.msra.mxu1 %v1073_v27  ;;  %1029 = vmatprep.mubr.msk.f32.mxu1 %vm1244_vm2, %v1245_v10  ;;  %v1079_v33 = vpack.c.bf16 %v468_v32, %v467_v31 }
  0xe3   : > { %1075 = vmatprep.subr.bf16.mxu1 %v1243_v5 }
  0xe5   : > { %v469_v34 = vld [vmem:[#allocation3 + $0x30] sm:$0xff]  ;;  %v470_v35 = vld [vmem:[#allocation3 + $0x38] sm:$0xff] }
  0xe6   : > { %1077 = vmatpush3.bf16.msra.mxu1 %v1076_v30  ;;  %v1082_v36 = vpack.c.bf16 %v470_v35, %v469_v34 }
  0xe7   : > { %1078 = vmatprep.subr.bf16.mxu1 %v1243_v5 }
  0xea   : > { %1080 = vmatpush3.bf16.msra.mxu1 %v1079_v33 }
  0xeb   : > { %1081 = vmatprep.subr.bf16.mxu1 %v1243_v5 }
  0xee   : > { %1083 = vmatpush3.bf16.msra.mxu1 %v1082_v36 }
  0xf1   : > { %1030 = vmatmul.mubr.msk.f32.vlgmr.msra.gmra.mrb[2].mxu1 %vm388_vm3, %v363_v26 }
 0x1b4   : > { %v458_v38 = vpop.f32.mrb[0].mxu1 }
 0x1b5   : > { %v1012_v39 = vpop.f32.mrb[1].mxu1  ;;  %v462_v44 = vmax.f32 %v458_v38, 0.0 }
 0x1c4   : > { %v537_v40 = vpop.f32.mrb[2].mxu1 }
 0x1c5   : > { %v541_v41 = vmax.f32 %v537_v40, 0.0  ;;  %v1031_v42 = vpop.f32.mrb[3].mxu1 }
 0x1c7   : > { %1032 = vmatprep.subr.msk.mxu0 %vm567_vm5, %v541_v41 }
 0x1c8   : > { %1033 = vmatpush3.msk.msra.mxu0 %vm567_vm5, %v541_v41 }
 0x1c9   : > { %1035 = vmatmul.mubr.msk.f32.vlgmr.msra.gmra.mrb[0].mxu0 %vm542_vm4, %v365_v43  ;;  %1046 = vmatprep.subr.msk.mxu0 %vm567_vm5, %v462_v44 }
 0x1ca   : > { %1047 = vmatpush3.msk.msra.mxu0 %vm567_vm5, %v462_v44  ;;  %1037 = vmatprep.mubr.msk.f32.mxu0 %vm542_vm4, %v366_v45 }
 0x1cd   : > { %1038 = vmatmul.mubr.msk.f32.gmra.mrb[2].mxu0 %vm542_vm4, %v367_v46 }
 0x1ce   : > { %1040 = vmatprep.mubr.msk.f32.mxu0 %vm542_vm4, %v368_v47 }
 0x1d1   : > { %1041 = vmatmul.mubr.msk.f32.gmra.mrb[4].mxu0 %vm542_vm4, %v369_v48 }
 0x1d2   : > { %1043 = vmatprep.mubr.msk.f32.mxu0 %vm542_vm4, %v370_v49 }
 0x1d5   : > { %1044 = vmatmul.mubr.msk.f32.gmra.mrb[6].mxu0 %vm542_vm4, %v371_v50 }
 0x1d6   : > { %1048 = vmatprep.mubr.msk.f32.mxu0 %vm542_vm4, %v364_v37 }
 0x1d9   : > { %1049 = vmatmul.mubr.msk.f32.vlgmr.msra.gmra.mrb[0].mxu0 %vm542_vm4, %v365_v43 }
 0x1da   : > { %1051 = vmatprep.mubr.msk.f32.mxu0 %vm542_vm4, %v366_v45 }
 0x1dd   : > { %1052 = vmatmul.mubr.msk.f32.gmra.mrb[2].mxu0 %vm542_vm4, %v367_v46 }
 0x1de   : > { %1054 = vmatprep.mubr.msk.f32.mxu0 %vm542_vm4, %v368_v47 }
 0x1e1   : > { %1055 = vmatmul.mubr.msk.f32.gmra.mrb[4].mxu0 %vm542_vm4, %v369_v48 }
 0x1e2   : > { %1057 = vmatprep.mubr.msk.f32.mxu0 %vm542_vm4, %v370_v49 }
 0x1e5   : > { %1058 = vmatmul.mubr.msk.f32.gmra.mrb[6].mxu0 %vm542_vm4, %v371_v50 }
 0x2ac   : > { %v1050_v51 = vpop.f32.mrb[0].mxu0 }
 0x2ad   : > { %v948_v52 = vmul.f32 -1.442695, %v1050_v51  ;;  %v745_v53 = vpop.f32.mrb[1].mxu0 }
 0x2ae   : > { %v947_v54 = vmul.f32 -1.442695, %v745_v53 }
 0x2af   : > { %1153 = vpow2.f32 %v948_v52 }
 0x2b0   : > { %1155 = vpow2.f32 %v947_v54  ;;  %v1053_v55 = vpop.f32.mrb[2].mxu0 }
 0x2b1   : > { %v950_v56 = vmul.f32 -1.442695, %v1053_v55  ;;  %v755_v57 = vpop.f32.mrb[3].mxu0 }
 0x2b2   : > { %v949_v58 = vmul.f32 -1.442695, %v755_v57 }
 0x2b3   : > { %1157 = vpow2.f32 %v950_v56 }
 0x2b4   : > { %1159 = vpow2.f32 %v949_v58  ;;  %v1056_v59 = vpop.f32.mrb[4].mxu0 }
 0x2b5   : > { %v952_v60 = vmul.f32 -1.442695, %v1056_v59  ;;  %v765_v61 = vpop.f32.mrb[5].mxu0 }
 0x2b6   : > { %v951_v62 = vmul.f32 -1.442695, %v765_v61 }
 0x2b7   : > { %1161 = vpow2.f32 %v952_v60 }
 0x2b8   : > { %1163 = vpow2.f32 %v951_v62  ;;  %v1059_v63 = vpop.f32.mrb[6].mxu0 }
 0x2b9   : > { %v1154_v0 = vpop.eup %1153  ;;  %v954_v1 = vmul.f32 -1.442695, %v1059_v63  ;;  %v775_v2 = vpop.f32.mrb[7].mxu0 }
 0x2ba   : > { %v1156_v3 = vpop.eup %1155  ;;  %v809_v4 = vadd.f32 1.0, %v1154_v0  ;;  %v953_v5 = vmul.f32 -1.442695, %v775_v2 }
 0x2bb   : > { %v808_v6 = vadd.f32 1.0, %v1156_v3  ;;  %1165 = vpow2.f32 %v954_v1 }
 0x2bc   : > { %1167 = vrcp.f32 %v809_v4 }
 0x2bd   : > { %v1158_v7 = vpop.eup %1157  ;;  %1169 = vrcp.f32 %v808_v6 }
 0x2be   : > { %v1160_v8 = vpop.eup %1159  ;;  %v811_v9 = vadd.f32 1.0, %v1158_v7  ;;  %1171 = vpow2.f32 %v953_v5 }
 0x2bf   : > { %v810_v10 = vadd.f32 1.0, %v1160_v8 }
 0x2c0   : > { %1173 = vrcp.f32 %v811_v9 }
 0x2c1   : > { %v1162_v11 = vpop.eup %1161  ;;  %1175 = vrcp.f32 %v810_v10 }
 0x2c2   : > { %v1164_v12 = vpop.eup %1163  ;;  %v813_v13 = vadd.f32 1.0, %v1162_v11 }
 0x2c3   : > { %v812_v14 = vadd.f32 1.0, %v1164_v12 }
 0x2c4   : > { %1177 = vrcp.f32 %v813_v13 }
 0x2c5   : > { %v1166_v15 = vpop.eup %1165  ;;  %1179 = vrcp.f32 %v812_v14 }
 0x2c6   : > { %v1168_v16 = vpop.eup %1167  ;;  %v815_v17 = vadd.f32 1.0, %v1166_v15 }
 0x2c7   : > { %v1170_v18 = vpop.eup %1169  ;;  %833 = vst.msk [vmem:[%s1334_s22 + $0x8] sm:$0xff] %vm310_vm1, %v1168_v16 }
 0x2c8   : > { %v1172_v19 = vpop.eup %1171  ;;  %832 = vst.msk [vmem:[%s1334_s22] sm:$0xff] %vm310_vm1, %v1170_v18  ;;  %1181 = vrcp.f32 %v815_v17 }
 0x2c9   : > { %v814_v20 = vadd.f32 1.0, %v1172_v19 }
 0x2ca   : > { %v1174_v21 = vpop.eup %1173 }
 0x2cb   : > { %v1176_v22 = vpop.eup %1175  ;;  %835 = vst.msk [vmem:[%s1334_s22 + $0x18] sm:$0xff] %vm310_vm1, %v1174_v21  ;;  %1183 = vrcp.f32 %v814_v20 }
 0x2cc   : > { %834 = vst.msk [vmem:[%s1334_s22 + $0x10] sm:$0xff] %vm310_vm1, %v1176_v22 }
 0x2ce   : > { %v1178_v23 = vpop.eup %1177 }
 0x2cf   : > { %v1180_v24 = vpop.eup %1179  ;;  %837 = vst.msk [vmem:[%s1334_s22 + $0x28] sm:$0xff] %vm310_vm1, %v1178_v23 }
 0x2d0   : > { %836 = vst.msk [vmem:[%s1334_s22 + $0x20] sm:$0xff] %vm310_vm1, %v1180_v24 }
 0x2d2   : > { %v1182_v25 = vpop.eup %1181 }
 0x2d3   : > { %839 = vst.msk [vmem:[%s1334_s22 + $0x38] sm:$0xff] %vm310_vm1, %v1182_v25 }
 0x2d5   : > { %v1184_v26 = vpop.eup %1183 }
 0x2d6   : > { %838 = vst.msk [vmem:[%s1334_s22 + $0x30] sm:$0xff] %vm310_vm1, %v1184_v26 }
 0x2d7 PF: > { %s13_s18 = sadd.s32 1, %s1239_s18   ;;  %s1468_s12 = smov %s1219_s13 }
 0x2d8   : > { %p10_p13 = scmp.ge.s32.totalorder %s13_s18, 6   ;;  %s1469_s13 = smov %s1317_s25 }
 0x2d9   : > { %s1470_s14 = smov %s1231_s16  ;;  %s1471_s15 = smov %s1235_s17 }
 0x2da   : > { %s1472_s16 = smov %s1475_s19  ;;  %s1473_s17 = smov %s1479_s20 }
 0x2db   :  { %12 = sbr.rel (!%p10_p13) target bundleno = 4 (0x4), region = 113 }

</bundles_post_ra>
